<compile_context>
chip_gen: v7x
topology: tpu7x:2x2x1
jax: 0.10.0
libtpu: 0.0.40
codegen_flags: <defaults>
</compile_context>

<pallas_src>
import functools

import jax
import jax.numpy as jnp
from jax import lax
from jax.experimental import pallas as pl
from jax.experimental.pallas import tpu as pltpu


def _temporal_block_kernel(K, dilation, pad, t_tile, c_out_p, has_ds,
                           x_ref, w1_ref, b1_ref, w2_ref, b2_ref, bd_ref, o_ref):
    # x_ref : (1, t_tile + 2*pad, C_in_p)   bf16 causally windowed input slab
    # w1_ref: (K*C_in_p, C_out_p [+ C_out_p])  bf16 taps stacked along contraction,
    #                                          optional fused 1x1 downsample columns
    # b1_ref, b2_ref, bd_ref: (1, C_out_p)  f32
    # w2_ref: (K*C_out_p, C_out_p)          bf16
    # o_ref : (1, t_tile, C_out_p)          f32
    th = t_tile + pad                       # conv1 output rows needed (incl. causal halo)
    x = x_ref[0]                            # (t_tile + 2*pad, C_in_p)

    # ---- conv1 (dilated causal) [+ fused 1x1 downsample columns]: single matmul ----
    cols1 = jnp.concatenate(
        [x[kk * dilation: kk * dilation + th, :] for kk in range(K)], axis=-1)
    y1 = jnp.dot(cols1, w1_ref[...], preferred_element_type=jnp.float32)   # (th, c1cols)
    h1 = jnp.maximum(y1[:, :c_out_p] + b1_ref[...], 0.0)

    # h1 rows corresponding to times < 0 must be causal zeros (not relu(b1)); this can
    # only happen near the start of the sequence, so mask by global time index.
    row = lax.broadcasted_iota(jnp.int32, (th, 1), 0)
    h1 = jnp.where(row + pl.program_id(1) * t_tile >= pad, h1, 0.0)

    # ---- residual path ----
    if has_ds:
        res = y1[pad:, c_out_p:] + bd_ref[...]              # (t_tile, C_out_p)
    else:
        res = x[2 * pad:, :].astype(jnp.float32)            # identity residual (C_in == C_out)

    # ---- conv2 (dilated causal): single matmul; dropout1/2 are eval-mode identity ----
    h1b = h1.astype(jnp.bfloat16)
    cols2 = jnp.concatenate(
        [h1b[kk * dilation: kk * dilation + t_tile, :] for kk in range(K)], axis=-1)
    y2 = jnp.dot(cols2, w2_ref[...], preferred_element_type=jnp.float32)
    h2 = jnp.maximum(y2 + b2_ref[...], 0.0)

    # ---- residual add + final ReLU ----
    o_ref[0] = jnp.maximum(h2 + res, 0.0).astype(o_ref.dtype)


def temporal_block_forward(x, params, *, kernel_size, stride, dilation, padding,
                           t_tile=256):
    """x: (B, C_in, T) float32 (PyTorch NCW). Returns (B, C_out, T) float32."""
    assert stride == 1, "TemporalBlock is used with stride=1"
    assert padding == (kernel_size - 1) * dilation, "causal TCN setting assumed"
    w1, b1, w2, b2, wd, bd = params
    B, C_in, T = x.shape
    C_out = w1.shape[0]
    K = kernel_size
    has_ds = wd is not None

    def rup(v, m):
        return ((v + m - 1) // m) * m

    # lane-pad channels to 128 multiples (dense MXU operands / unmasked stores)
    cin_p = rup(C_in, 128)
    cout_p = rup(C_out, 128)

    # time tiling (sublane-aligned); halo of 2*pad is recomputed per tile
    t_tile = min(rup(t_tile, 8), rup(T, 8))
    n_tiles = -(-T // t_tile)
    t_win = t_tile + 2 * padding

    # ---- input: time-major, lane-padded, bf16, overlapping time windows ----
    x_t = jnp.transpose(x, (0, 2, 1))                                   # (B, T, C_in)
    x_t = jnp.pad(x_t, ((0, 0), (0, 0), (0, cin_p - C_in)))
    x_t = jnp.pad(x_t, ((0, 0), (2 * padding, n_tiles * t_tile - T), (0, 0)))
    x_t = x_t.astype(jnp.bfloat16)
    x_win = jnp.stack(
        [x_t[:, t * t_tile: t * t_tile + t_win, :] for t in range(n_tiles)], axis=1)
    x_win = x_win.reshape(B * n_tiles, t_win, cin_p)

    # ---- weights: taps folded into the contraction dim (im2col), lane-padded ----
    def pad_w(w_kio, ci_p, co_p):
        Kk, ci, co = w_kio.shape
        wp = jnp.zeros((Kk, ci_p, co_p), jnp.float32).at[:, :ci, :co].set(w_kio)
        return wp.reshape(Kk * ci_p, co_p)

    w1_kio = jnp.transpose(w1, (2, 1, 0))                 # (K, C_in, C_out)
    w2_kio = jnp.transpose(w2, (2, 1, 0))                 # (K, C_out, C_out)
    w1_mat = pad_w(w1_kio, cin_p, cout_p)                 # (K*C_in_p, C_out_p)
    w2_mat = pad_w(w2_kio, cout_p, cout_p)                # (K*C_out_p, C_out_p)

    if has_ds:
        # fuse the 1x1 downsample into conv1's last tap (tap K-1 reads x at the output time)
        wd_io = jnp.transpose(wd[:, :, 0], (1, 0))        # (C_in, C_out)
        wres = jnp.zeros((K * cin_p, cout_p), jnp.float32)
        wres = wres.at[(K - 1) * cin_p:(K - 1) * cin_p + C_in, :C_out].set(wd_io)
        w1_mat = jnp.concatenate([w1_mat, wres], axis=1)  # (K*C_in_p, 2*C_out_p)
        bd_p = jnp.zeros((1, cout_p), jnp.float32).at[0, :C_out].set(bd)
    else:
        bd_p = jnp.zeros((1, cout_p), jnp.float32)

    w1_mat = w1_mat.astype(jnp.bfloat16)
    w2_mat = w2_mat.astype(jnp.bfloat16)
    b1_p = jnp.zeros((1, cout_p), jnp.float32).at[0, :C_out].set(b1)
    b2_p = jnp.zeros((1, cout_p), jnp.float32).at[0, :C_out].set(b2)
    c1cols = w1_mat.shape[1]

    kernel = functools.partial(_temporal_block_kernel, K, dilation, padding,
                               t_tile, cout_p, has_ds)

    out = pl.pallas_call(
        kernel,
        out_shape=jax.ShapeDtypeStruct((B * n_tiles, t_tile, cout_p), jnp.float32),
        grid_spec=pltpu.PrefetchScalarGridSpec(
            num_scalar_prefetch=0,
            grid=(B, n_tiles),
            in_specs=[
                pl.BlockSpec((1, t_win, cin_p), lambda b, t: (b * n_tiles + t, 0, 0)),
                pl.BlockSpec((K * cin_p, c1cols), lambda b, t: (0, 0)),
                pl.BlockSpec((1, cout_p), lambda b, t: (0, 0)),
                pl.BlockSpec((K * cout_p, cout_p), lambda b, t: (0, 0)),
                pl.BlockSpec((1, cout_p), lambda b, t: (0, 0)),
                pl.BlockSpec((1, cout_p), lambda b, t: (0, 0)),
            ],
            out_specs=pl.BlockSpec((1, t_tile, cout_p),
                                   lambda b, t: (b * n_tiles + t, 0, 0)),
        ),
        compiler_params=pltpu.CompilerParams(
            dimension_semantics=("parallel", "parallel"),
            # explicit budget with headroom under v7x's 64 MiB physical VMEM
            vmem_limit_bytes=48 * 1024 * 1024,
        ),
    )(x_win, w1_mat, b1_p, w2_mat, b2_p, bd_p)

    out = out.reshape(B, n_tiles * t_tile, cout_p)[:, :T, :C_out]
    return jnp.transpose(out, (0, 2, 1))                  # back to (B, C_out, T)


def make_params(key, C_in, C_out, K):
    """Deterministic synthetic params mirroring weight_norm(Conv1d) shapes."""
    ks = jax.random.split(key, 8)

    def weight_norm_conv(kv, kg, shape):
        v = jax.random.normal(kv, shape, jnp.float32) * 0.01                 # weight_v
        g = jax.random.uniform(kg, (shape[0], 1, 1), jnp.float32, 0.5, 1.5)  # weight_g
        norm = jnp.sqrt(jnp.sum(v * v, axis=(1, 2), keepdims=True))
        return g * v / norm                                                   # effective weight

    w1 = weight_norm_conv(ks[0], ks[1], (C_out, C_in, K))
    b1 = jax.random.normal(ks[2], (C_out,), jnp.float32) * 0.01
    w2 = weight_norm_conv(ks[3], ks[4], (C_out, C_out, K))
    b2 = jax.random.normal(ks[5], (C_out,), jnp.float32) * 0.01
    if C_in != C_out:
        wd = jax.random.normal(ks[6], (C_out, C_in, 1), jnp.float32) * 0.01
        bd = jax.random.normal(ks[7], (C_out,), jnp.float32) * 0.01
    else:
        wd, bd = None, None
    return (w1, b1, w2, b2, wd, bd)


def reference_forward(x, params, *, kernel_size, stride, dilation, padding):
    """Pure-JAX reference mirroring the PyTorch module op-for-op (eval mode, f32)."""
    w1, b1, w2, b2, wd, bd = params
    dn = ('NCH', 'OIH', 'NCH')

    def conv(inp, w, b):
        y = lax.conv_general_dilated(inp, w, window_strides=(stride,),
                                     padding=[(padding, padding)],
                                     rhs_dilation=(dilation,),
                                     dimension_numbers=dn)
        return y + b[None, :, None]

    def chomp(y):
        return y[:, :, :-padding] if padding > 0 else y

    h = jax.nn.relu(chomp(conv(x, w1, b1)))     # conv1 -> chomp1 -> relu1 (-> dropout1 id)
    h = jax.nn.relu(chomp(conv(h, w2, b2)))     # conv2 -> chomp2 -> relu2 (-> dropout2 id)
    if wd is not None:
        res = lax.conv_general_dilated(x, wd, (1,), [(0, 0)],
                                       dimension_numbers=dn) + bd[None, :, None]
    else:
        res = x
    return jax.nn.relu(h + res)


if __name__ == "__main__":
    key = jax.random.PRNGKey(0)
    k1, k2, k3 = jax.random.split(key, 3)

    # (name, key, B, C_in, C_out, T, K, dilation, t_tile)
    cases = [
        ("downsample", k1, 2, 4, 8, 16, 3, 2, 256),   # C_in != C_out -> fused 1x1 residual
        ("identity",   k2, 2, 8, 8, 16, 3, 1, 256),   # C_in == C_out -> plain residual add
        ("time_tiled", k3, 2, 4, 8, 40, 3, 2, 16),    # exercises the time-tile grid axis
    ]

    for name, ck, B, C_in, C_out, T, K, dilation, tt in cases:
        padding = (K - 1) * dilation
        kx, kp = jax.random.split(ck)
        x = jax.random.normal(kx, (B, C_in, T), jnp.float32)
        params = make_params(kp, C_in, C_out, K)

        out = temporal_block_forward(x, params, kernel_size=K, stride=1,
                                     dilation=dilation, padding=padding, t_tile=tt)
        out = jax.block_until_ready(out)

        ref = reference_forward(x, params, kernel_size=K, stride=1,
                                dilation=dilation, padding=padding)
        assert out.shape == (B, C_out, T), (name, out.shape)
        max_err = float(jnp.max(jnp.abs(out - ref)))
        # bf16 matmul operands (f32 accumulation) -> loosened tolerance
        assert max_err < 2e-2, f"{name}: mismatch vs reference: {max_err}"

    print("KERNEL_OK")
</pallas_src>

<mosaic_0001>
module attributes {stable_mosaic.version = 11 : i64} {
  func.func @_temporal_block_kernel(%arg0: i32, %arg1: i32, %arg2: memref<1x24x128xbf16, #tpu.memory_space<vmem>>, %arg3: memref<384x256xbf16, #tpu.memory_space<vmem>>, %arg4: memref<1x128xf32, #tpu.memory_space<vmem>>, %arg5: memref<384x128xbf16, #tpu.memory_space<vmem>>, %arg6: memref<1x128xf32, #tpu.memory_space<vmem>>, %arg7: memref<1x128xf32, #tpu.memory_space<vmem>>, %arg8: memref<1x16x128xf32, #tpu.memory_space<vmem>>) attributes {dimension_semantics = [#tpu.dimension_semantics<parallel>, #tpu.dimension_semantics<parallel>], iteration_bounds = array<i64: 2, 1>, scalar_prefetch = 0 : i64, scratch_operands = 0 : i64, tpu.core_type = #tpu.core_type<tc>, window_params = [{transform_indices = @transform_0, window_bounds = array<i64: 1, 24, 128>}, {pipeline_mode = #tpu.pipeline_mode<synchronous>, transform_indices = @transform_1, window_bounds = array<i64: 384, 256>}, {pipeline_mode = #tpu.pipeline_mode<synchronous>, transform_indices = @transform_2, window_bounds = array<i64: 1, 128>}, {pipeline_mode = #tpu.pipeline_mode<synchronous>, transform_indices = @transform_3, window_bounds = array<i64: 384, 128>}, {pipeline_mode = #tpu.pipeline_mode<synchronous>, transform_indices = @transform_4, window_bounds = array<i64: 1, 128>}, {pipeline_mode = #tpu.pipeline_mode<synchronous>, transform_indices = @transform_5, window_bounds = array<i64: 1, 128>}, {transform_indices = @transform_6, window_bounds = array<i64: 1, 16, 128>}]} {
    %c0 = arith.constant 0 : index
    %c0_0 = arith.constant 0 : index
    %c0_1 = arith.constant 0 : index
    %0 = vector.load %arg2[%c0, %c0_0, %c0_1] : memref<1x24x128xbf16, #tpu.memory_space<vmem>>, vector<1x24x128xbf16>
    %1 = vector.shape_cast %0 : vector<1x24x128xbf16> to vector<24x128xbf16>
    %2 = vector.extract_strided_slice %1 {offsets = [0, 0], sizes = [20, 128], strides = [1, 1]} : vector<24x128xbf16> to vector<20x128xbf16>
    %3 = vector.extract_strided_slice %1 {offsets = [2, 0], sizes = [20, 128], strides = [1, 1]} : vector<24x128xbf16> to vector<20x128xbf16>
    %4 = vector.extract_strided_slice %1 {offsets = [4, 0], sizes = [20, 128], strides = [1, 1]} : vector<24x128xbf16> to vector<20x128xbf16>
    %5 = tpu.concatenate %2, %3, %4 in 1 : vector<20x128xbf16>, vector<20x128xbf16>, vector<20x128xbf16> -> vector<20x384xbf16>
    %c0_2 = arith.constant 0 : index
    %c0_3 = arith.constant 0 : index
    %6 = vector.load %arg3[%c0_2, %c0_3] : memref<384x256xbf16, #tpu.memory_space<vmem>>, vector<384x256xbf16>
    %cst = arith.constant dense<0.000000e+00> : vector<20x256xf32>
    %7 = tpu.matmul %5, %6, %cst {dimension_numbers = #tpu.dot_dimension_numbers<[1], [0], [0], [1], [0, 0, 1, 1], [], []>} : vector<20x384xbf16>, vector<384x256xbf16>, vector<20x256xf32> -> vector<20x256xf32>
    %8 = vector.extract_strided_slice %7 {offsets = [0, 0], sizes = [20, 128], strides = [1, 1]} : vector<20x256xf32> to vector<20x128xf32>
    %c0_4 = arith.constant 0 : index
    %c0_5 = arith.constant 0 : index
    %9 = vector.load %arg4[%c0_4, %c0_5] : memref<1x128xf32, #tpu.memory_space<vmem>>, vector<1x128xf32>
    %10 = vector.broadcast %9 : vector<1x128xf32> to vector<20x128xf32>
    %11 = arith.addf %8, %10 : vector<20x128xf32>
    %cst_6 = arith.constant 0.000000e+00 : f32
    %12 = vector.broadcast %cst_6 : f32 to vector<20x128xf32>
    %13 = arith.maximumf %11, %12 : vector<20x128xf32>
    %14 = tpu.iota {dimensions = array<i32: 0>} : vector<20x1xi32>
    %c16_i32 = arith.constant 16 : i32
    %15 = arith.muli %arg1, %c16_i32 : i32
    %16 = vector.broadcast %15 : i32 to vector<20x1xi32>
    %17 = arith.addi %14, %16 : vector<20x1xi32>
    %c4_i32 = arith.constant 4 : i32
    %18 = vector.broadcast %c4_i32 : i32 to vector<20x1xi32>
    %19 = arith.cmpi sge, %17, %18 : vector<20x1xi32>
    %cst_7 = arith.constant 0.000000e+00 : f32
    %20 = vector.shape_cast %19 : vector<20x1xi1> to vector<20x1xi1>
    %21 = vector.broadcast %20 : vector<20x1xi1> to vector<20x128xi1>
    %22 = vector.broadcast %cst_7 : f32 to vector<20x128xf32>
    %23 = arith.select %21, %13, %22 : vector<20x128xi1>, vector<20x128xf32>
    %24 = vector.extract_strided_slice %7 {offsets = [4, 128], sizes = [16, 128], strides = [1, 1]} : vector<20x256xf32> to vector<16x128xf32>
    %c0_8 = arith.constant 0 : index
    %c0_9 = arith.constant 0 : index
    %25 = vector.load %arg7[%c0_8, %c0_9] : memref<1x128xf32, #tpu.memory_space<vmem>>, vector<1x128xf32>
    %26 = vector.broadcast %25 : vector<1x128xf32> to vector<16x128xf32>
    %27 = arith.addf %24, %26 : vector<16x128xf32>
    %28 = arith.truncf %23 : vector<20x128xf32> to vector<20x128xbf16>
    %29 = vector.extract_strided_slice %28 {offsets = [0, 0], sizes = [16, 128], strides = [1, 1]} : vector<20x128xbf16> to vector<16x128xbf16>
    %30 = vector.extract_strided_slice %28 {offsets = [2, 0], sizes = [16, 128], strides = [1, 1]} : vector<20x128xbf16> to vector<16x128xbf16>
    %31 = vector.extract_strided_slice %28 {offsets = [4, 0], sizes = [16, 128], strides = [1, 1]} : vector<20x128xbf16> to vector<16x128xbf16>
    %32 = tpu.concatenate %29, %30, %31 in 1 : vector<16x128xbf16>, vector<16x128xbf16>, vector<16x128xbf16> -> vector<16x384xbf16>
    %c0_10 = arith.constant 0 : index
    %c0_11 = arith.constant 0 : index
    %33 = vector.load %arg5[%c0_10, %c0_11] : memref<384x128xbf16, #tpu.memory_space<vmem>>, vector<384x128xbf16>
    %cst_12 = arith.constant dense<0.000000e+00> : vector<16x128xf32>
    %34 = tpu.matmul %32, %33, %cst_12 {dimension_numbers = #tpu.dot_dimension_numbers<[1], [0], [0], [1], [0, 0, 1, 1], [], []>} : vector<16x384xbf16>, vector<384x128xbf16>, vector<16x128xf32> -> vector<16x128xf32>
    %c0_13 = arith.constant 0 : index
    %c0_14 = arith.constant 0 : index
    %35 = vector.load %arg6[%c0_13, %c0_14] : memref<1x128xf32, #tpu.memory_space<vmem>>, vector<1x128xf32>
    %36 = vector.broadcast %35 : vector<1x128xf32> to vector<16x128xf32>
    %37 = arith.addf %34, %36 : vector<16x128xf32>
    %cst_15 = arith.constant 0.000000e+00 : f32
    %38 = vector.broadcast %cst_15 : f32 to vector<16x128xf32>
    %39 = arith.maximumf %37, %38 : vector<16x128xf32>
    %40 = arith.addf %39, %27 : vector<16x128xf32>
    %cst_16 = arith.constant 0.000000e+00 : f32
    %41 = vector.broadcast %cst_16 : f32 to vector<16x128xf32>
    %42 = arith.maximumf %40, %41 : vector<16x128xf32>
    %c0_17 = arith.constant 0 : index
    %c0_18 = arith.constant 0 : index
    %c0_19 = arith.constant 0 : index
    %43 = vector.load %arg8[%c0_17, %c0_18, %c0_19] : memref<1x16x128xf32, #tpu.memory_space<vmem>>, vector<1x16x128xf32>
    %44 = vector.shape_cast %43 : vector<1x16x128xf32> to vector<16x128xf32>
    %45 = vector.shape_cast %42 : vector<16x128xf32> to vector<1x16x128xf32>
    tpu.vector_store %arg8[%c0_17, %c0_18, %c0_19], %45 {strides = array<i32>} : memref<1x16x128xf32, #tpu.memory_space<vmem>>, vector<1x16x128xf32>,
    return
  }
  func.func @transform_0(%arg0: i32, %arg1: i32) -> (i32, i32, i32) {
    %c1_i32 = arith.constant 1 : i32
    %0 = arith.muli %arg0, %c1_i32 : i32
    %1 = arith.addi %0, %arg1 : i32
    %c0_i32 = arith.constant 0 : i32
    %c0_i32_0 = arith.constant 0 : i32
    %c0_i32_1 = arith.constant 0 : i32
    return %1, %c0_i32, %c0_i32_0 : i32, i32, i32
  }
  func.func @transform_1(%arg0: i32, %arg1: i32) -> (i32, i32) {
    %c0_i32 = arith.constant 0 : i32
    %c0_i32_0 = arith.constant 0 : i32
    %c0_i32_1 = arith.constant 0 : i32
    return %c0_i32, %c0_i32_0 : i32, i32
  }
  func.func @transform_2(%arg0: i32, %arg1: i32) -> (i32, i32) {
    %c0_i32 = arith.constant 0 : i32
    %c0_i32_0 = arith.constant 0 : i32
    %c0_i32_1 = arith.constant 0 : i32
    return %c0_i32, %c0_i32_0 : i32, i32
  }
  func.func @transform_3(%arg0: i32, %arg1: i32) -> (i32, i32) {
    %c0_i32 = arith.constant 0 : i32
    %c0_i32_0 = arith.constant 0 : i32
    %c0_i32_1 = arith.constant 0 : i32
    return %c0_i32, %c0_i32_0 : i32, i32
  }
  func.func @transform_4(%arg0: i32, %arg1: i32) -> (i32, i32) {
    %c0_i32 = arith.constant 0 : i32
    %c0_i32_0 = arith.constant 0 : i32
    %c0_i32_1 = arith.constant 0 : i32
    return %c0_i32, %c0_i32_0 : i32, i32
  }
  func.func @transform_5(%arg0: i32, %arg1: i32) -> (i32, i32) {
    %c0_i32 = arith.constant 0 : i32
    %c0_i32_0 = arith.constant 0 : i32
    %c0_i32_1 = arith.constant 0 : i32
    return %c0_i32, %c0_i32_0 : i32, i32
  }
  func.func @transform_6(%arg0: i32, %arg1: i32) -> (i32, i32, i32) {
    %c1_i32 = arith.constant 1 : i32
    %0 = arith.muli %arg0, %c1_i32 : i32
    %1 = arith.addi %0, %arg1 : i32
    %c0_i32 = arith.constant 0 : i32
    %c0_i32_0 = arith.constant 0 : i32
    %c0_i32_1 = arith.constant 0 : i32
    return %1, %c0_i32, %c0_i32_0 : i32, i32, i32
  }
}

</mosaic_0001>

<bundles_post_ra>
// kernel: tpu_custom_call.1
= control target key start
LH: loop header
LB: loop body
LE: loop exit
PB: predicated region body
PF: predicated region fallthrough
CT: control target
= control target key end

     0   :  { %11 = vsyncpa [#allocation3], 0  ;;  %s2071_s0 = inlined_call_operand.hbm [shape: bf16[2,24,128], index: 0, kind: input, shape index: {}]   ;;  %s2072_s1 = inlined_call_operand.hbm [shape: bf16[384,256], index: 1, kind: input, shape index: {}]   ;;  %s2073_s2 = inlined_call_operand.vmem [shape: f32[1,128], index: 2, kind: input, shape index: {}]   ;;  %s2074_s3 = inlined_call_operand.hbm [shape: bf16[384,128], index: 3, kind: input, shape index: {}]   ;;  %s2075_s4 = inlined_call_operand.vmem [shape: f32[1,128], index: 4, kind: input, shape index: {}]   ;;  %s2076_s5 = inlined_call_operand.vmem [shape: f32[1,128], index: 5, kind: input, shape index: {}]   ;;  %s2077_s6 = inlined_call_operand.hbm [shape: f32[2,16,128], index: 6, kind: output, shape index: {}]  }
   0x1   :  { %13 = vsyncpa [#allocation3 + $0x1], 0 }
   0x2   :  { %14 = vsyncpa [#allocation6], 0 }
   0x3   :  { %15 = vsyncpa [#allocation4], 0 }
   0x4   :  { %17 = vsyncpa [#allocation4 + $0x1], 0  ;;  %s1776_s21 = smov 0   ;;  %s1778_s22 = smov 0  }
   0x5   :  { %s1780_s23 = smov 0   ;;  %s1782_s24 = smov 0  }
   0x6   :  { %s1784_s25 = smov 0   ;;  %s1786_s26 = smov 0  }
   0x7 LB: > { %s1207_s27 = sadd.s32 4294967295, %s1725_s26   ;;  %s1208_s28 = sadd.s32 4294967294, %s1725_s26   ;;  %s1725_s26 = sphi %s1786_s26, %s23_s26   ;;  %s1721_s25 = sphi %s1784_s25, %s2106_s25   ;;  %s1717_s24 = sphi %s1782_s24, %s2105_s24   ;;  %s1713_s23 = sphi %s1780_s23, %s2104_s23   ;;  %s1709_s22 = sphi %s1778_s22, %s2103_s22   ;;  %s1705_s21 = sphi %s1776_s21, %s2102_s21  }
   0x8   : > { %p57_p0 = scmp.ne.s32.totalorder %s1709_s22, %s1705_s21  ;;  %p1810_p1 = scmp.eq.s32.totalorder %s1207_s27, 0 }
   0x9   : > { %p1814_p2 = scmp.eq.s32.totalorder %s1207_s27, 1  ;;  %p194_p3 = scmp.eq.s32.totalorder %s1208_s28, 1 }
   0xa   : > { %s2085_s29 = scalar_select %p1810_p1, 1, 0 }
   0xb   : > { %p1820_p4 = por %p1810_p1, %p57_p0  ;;  %p1209_p5 = scmp.ge.s32.totalorder %s1725_s26, 1 }
   0xc   : > { %p1825_p6 = por %p194_p3, %p57_p0  ;;  %p201_p7 = scmp.lt.s32.totalorder %s1725_s26, 3 }
   0xd   : > { %s2087_s7 = scalar_select %p1820_p4, 1, 0 }
   0xe   : > { %s2088_s8 = scalar_select %p1825_p6, 1, 0 }
   0xf   : > { %p1830_p8 = pnand %p1209_p5, %p201_p7  ;;  %s1727_s10 = smov [#allocation5]  }
  0x10   : > { %2089 = sst [smem:[#allocation12_spill]] %s2088_s8  ;;  %s213_s11 = sshll.u32 %s1727_s10, 4  ;;  %s1834_s11 = int_to_ptr.vmem [resolvable:$true] %s213_s11 }
  0x11   : > { %p1374_p9 = pneg %p1830_p8  ;;  %s1728_s13 = smov [#allocation7]  }
  0x12   : > { %s229_s14 = sshll.u32 %s1728_s13, 4  ;;  %s1553_s17 = scalar_lea.hbm %s2072_s1, 6144  ;;  %s1845_s14 = int_to_ptr.vmem [resolvable:$true] %s229_s14 }
  0x13   : > { %p1841_p11 = pnand %p1374_p9, %p1810_p1  ;;  %p1554_p12 = scmp.ne.s32.totalorder %s2072_s1, %s1553_s17 }
  0x14   : > { %p1560_p5 = scmp.lt.u32.totalorder %s1553_s17, %s2072_s1 }
  0x15   : > { %p1555_p13 = pneg %p1841_p11 }
  0x17   : > { %p1556_p0 = pnand %p1555_p13, %p1554_p12 }
  0x19   : > { %p1557_p3 = pneg %p1556_p0 }
  0x1b   : > { %p1562_p7 = pnand %p1560_p5, %p1557_p3 }
  0x1d   : > { %1565 = shalt.err (!%p1562_p7)
}
  0x1e   : > { %s1566_s28 = scalar_lea.vmem %s1834_s11, 6144  ;;  %p1574_p1 = scmp.lt.s32.totalorder %s1834_s11, %s1834_s11 }
  0x1f   : > { %p1567_p9 = scmp.ne.s32.totalorder %s1834_s11, %s1566_s28  ;;  %p1575_p12 = scmp.lt.s32.totalorder %s1566_s28, %s1566_s28 }
  0x21   : > { %p1569_p10 = pnand %p1567_p9, %p1555_p13  ;;  %p1576_p0 = por %p1575_p12, %p1574_p1 }
  0x23   : > { %p1570_p6 = pneg %p1569_p10 }
  0x25   : > { %p1577_p4 = pnand %p1576_p0, %p1570_p6 }
  0x27   : > { %1580 = shalt.err (!%p1577_p4)
}
  0x28   : > { %s1729_s10 = smov 128   ;;  %s1730_s13 = smov 8  }
  0x29   : > { %1377 = dma.hbm_to_vmem [thread:$0]  (!%p1841_p11), %s2072_s1, 6144, %s1834_s11, [#allocation6], %s1729_s10, %s1729_s10, %s1730_s13  }
  0x2a   : > { %s1581_s19 = scalar_lea.hbm %s2074_s3, 3072 }
  0x2b   : > { %p1582_p1 = scmp.ne.s32.totalorder %s2074_s3, %s1581_s19  ;;  %p1588_p10 = scmp.lt.u32.totalorder %s1581_s19, %s2074_s3 }
  0x2d   : > { %p1584_p4 = pnand %p1582_p1, %p1555_p13 }
  0x2f   : > { %p1585_p6 = pneg %p1584_p4 }
  0x31   : > { %p1590_p3 = pnand %p1588_p10, %p1585_p6 }
  0x33   : > { %1593 = shalt.err (!%p1590_p3)
}
  0x34   : > { %s1594_s11 = scalar_lea.vmem %s1845_s14, 3072  ;;  %p1602_p12 = scmp.lt.s32.totalorder %s1845_s14, %s1845_s14 }
  0x35   : > { %p1595_p5 = scmp.ne.s32.totalorder %s1845_s14, %s1594_s11  ;;  %p1603_p0 = scmp.lt.s32.totalorder %s1594_s11, %s1594_s11 }
  0x37   : > { %p1597_p7 = pnand %p1595_p5, %p1555_p13  ;;  %p1604_p1 = por %p1603_p0, %p1602_p12 }
  0x39   : > { %p1598_p9 = pneg %p1597_p7 }
  0x3b   : > { %p1605_p4 = pnand %p1604_p1, %p1598_p9 }
  0x3d   : > { %1608 = shalt.err (!%p1605_p4)
}
  0x3e   : > { %s2082_s8 = smov 64   ;;  %s2083_s10 = smov 4  }
  0x3f   : > { %1380 = dma.hbm_to_vmem [thread:$0]  (!%p1841_p11), %s2074_s3, 3072, %s1845_s14, [#allocation6], %s2082_s8, %s2082_s8, %s2083_s10  }
  0x40   : > { %s35_s16 = sadd.s32 1, %s1721_s25  ;;  %s44_s17 = sadd.s32 1, %s1713_s23 }
  0x41   : > { %p37_p13 = scmp.ge.s32.totalorder %s35_s16, 2  ;;  %p51_p6 = scmp.ne.s32.totalorder %s1713_s23, %s1709_s22 }
  0x42   : > { %p52_p10 = scmp.eq.s32.totalorder %s1725_s26, 0  ;;  %p1391_p3 = scmp.lt.s32.totalorder %s1725_s26, 2 }
  0x43   : > { %s2108_s16 = smov (%p37_p13, %s35_s16), 0  ;;  %p1912_p7 = por %p1814_p2, %p51_p6 }
  0x44   : > { %p53_p5 = por %p52_p10, %p51_p6  ;;  %s41_s18 = ssub.s32 %s1721_s25, %s2108_s16 }
  0x45   : > { %s2092_s12 = scalar_select %p1912_p7, 1, 0 }
  0x46   : > { %s249_s19 = sand.u32 1, %s1713_s23   ;;  %p42_p9 = scmp.eq.s32.totalorder %s41_s18, 0 }
  0x47   : > { %s1359_s14 = smul.u32 12, %s249_s19  ;;  %p1919_p11 = pnand %p1391_p3, %p53_p5 }
  0x48   : > { %s1924_s27 = scalar_select %p42_p9, %s1713_s23, %s44_s17  }
  0x49   : > { %s1360_s28 = smul.u32 192, %s1721_s25  ;;  %s253_s11 = scalar_lea.vmem [#allocation2], %s1359_s14 }
  0x4a   : > { %s261_s13 = sshll.u32 %s253_s11, 4  ;;  %s1934_s18 = scalar_lea.sflag [#allocation3], %s249_s19  ;;  %s1932_s13 = int_to_ptr.vmem [resolvable:$true] %s261_s13 }
  0x4b   : > { %s1930_s8 = scalar_lea.hbm %s2071_s0, %s1360_s28  ;;  %p1611_p12 = pneg %p1919_p11 }
  0x4c   : > { %s1609_s10 = scalar_lea.hbm %s1930_s8, 192  ;;  %s1614_s28 = scalar_lea.hbm %s2071_s0, 384 }
  0x4d   : > { %p1610_p2 = scmp.ne.s32.totalorder %s1930_s8, %s1609_s10  ;;  %p1615_p4 = scmp.lt.u32.totalorder %s1930_s8, %s2071_s0 }
  0x4e   : > { %p1616_p13 = scmp.lt.u32.totalorder %s1614_s28, %s1609_s10  ;;  %p1618_p10 = scmp.lt.u32.totalorder %s1609_s10, %s1930_s8 }
  0x4f   : > { %p1612_p0 = pnand %p1611_p12, %p1610_p2 }
  0x50   : > { %p1617_p6 = por %p1616_p13, %p1615_p4 }
  0x51   : > { %p1613_p1 = pneg %p1612_p0 }
  0x52   : > { %p1619_p3 = por %p1618_p10, %p1617_p6 }
  0x54   : > { %p1620_p5 = pnand %p1619_p3, %p1613_p1 }
  0x56   : > { %1623 = shalt.err (!%p1620_p5)
}
  0x57   : > { %s1624_s19 = scalar_lea.vmem %s1932_s13, 192  ;;  %s1733_s15 = smov [#allocation2]  }
  0x58   : > { %p1625_p9 = scmp.ne.s32.totalorder %s1932_s13, %s1624_s19  ;;  %s1629_s17 = sshll.u32 %s1733_s15, 4  ;;  %s1630_s17 = int_to_ptr.vmem [resolvable:$false] %s1629_s17 }
  0x59   : > { %s1631_s14 = scalar_lea.vmem %s1630_s17, 384  ;;  %p1632_p7 = scmp.lt.s32.totalorder %s1932_s13, %s1630_s17 }
  0x5a   : > { %p1627_p2 = pnand %p1625_p9, %p1611_p12  ;;  %p1633_p4 = scmp.lt.s32.totalorder %s1631_s14, %s1624_s19 }
  0x5c   : > { %p1628_p0 = pneg %p1627_p2  ;;  %p1634_p13 = por %p1633_p4, %p1632_p7 }
  0x5e   : > { %p1635_p6 = pnand %p1634_p13, %p1628_p0 }
  0x60   : > { %1638 = shalt.err (!%p1635_p6)
}
  0x61   : > { %s2094_s10 = smov 4   ;;  %s2095_s28 = smov 64  }
  0x62   : > { %1384 = dma.hbm_to_vmem [thread:$0]  (!%p1919_p11), %s1930_s8, 192, %s1932_s13, %s1934_s18, %s2095_s28, %s2095_s28, %s2094_s10  }
  0x63   : > { %273 = sbr.rel (%p1830_p8) target bundleno = 676 (0x2a4), region = 44  ;;  %s1968_s11 = sand.u32 (!%p1830_p8), 1, %s1709_s22  }
  0x64   : > { %s1361_s30 = smul.u32 (!%p1830_p8), 12, %s1968_s11  ;;  %s276_s19 = scalar_lea.sflag (!%p1830_p8), [#allocation3], %s1968_s11 }
  0x65   : > { %p2096_p7 = scmp.ne.s32.totalorder (!%p1830_p8), %s2087_s7, 0 }
  0x66   : > { %s1972_s15 = scalar_lea.vmem (!%p1830_p8), [#allocation2], %s1361_s30 }
  0x6a   : > { %1692 = dma.done.wait (%p2096_p7), %s276_s19, 192  }
  0x6b   : > { %1694 = vsyncadd (%p2096_p7), %s276_s19, 4294967104  ;;  %p2097_p11 = scmp.ne.s32.totalorder %s2085_s29, 0 }
  0x6d   : > { %1696 = dma.done.wait (%p2097_p11), [#allocation6], 9216  }
  0x6e   : > { %1698 = vsyncadd (%p2097_p11), [#allocation6], 4294958080  ;;  %v1734_v0 = vmov 0   ;;  %v1455_v1 = vld [vmem:[#allocation5 + $0x4] ss:$8 sps:$4 sm:$0xff]   ;;  %vm332_vm0 = vcmask 1046528  }
  0x6f   : > { %715 = vmatprep.mubr.bf16.mxu1 %v1734_v0  ;;  %v1457_v2 = vld [vmem:[#allocation5] ss:$8 sps:$4 sm:$0xff]   ;;  %632 = vmatprep.subr.bf16.mxu0 %v1455_v1  ;;  %v1458_v3 = vld [vmem:[#allocation5 + $0x14] ss:$8 sps:$4 sm:$0xff]   ;;  %v1460_v4 = vld [vmem:[#allocation5 + $0x10] ss:$8 sps:$4 sm:$0xff]  }
  0x70   : > { %633 = vmatpush1.bf16.msra.mxu0 %v1457_v2  ;;  %v1461_v5 = vld [vmem:[#allocation5 + $0x24] ss:$8 sps:$4 sm:$0xff]   ;;  %v1463_v6 = vld [vmem:[#allocation5 + $0x20] ss:$8 sps:$4 sm:$0xff]   ;;  %v1464_v7 = vld [vmem:[#allocation5 + $0x34] ss:$8 sps:$4 sm:$0xff]  }
  0x71   : > { %634 = vmatprep.subr.bf16.mxu0 %v1458_v3  ;;  %v1466_v8 = vld [vmem:[#allocation5 + $0x30] ss:$8 sps:$4 sm:$0xff]   ;;  %v1479_v9 = vld [vmem:[#allocation5 + $0x104] ss:$8 sps:$4 sm:$0xff]   ;;  %v1481_v10 = vld [vmem:[#allocation5 + $0x100] ss:$8 sps:$4 sm:$0xff]  }
  0x72   : > { %v1467_v11 = vld [vmem:[#allocation5 + $0x44] ss:$8 sps:$4 sm:$0xff]   ;;  %683 = vmatprep.subr.bf16.mxu1 %v1479_v9  ;;  %v1485_v12 = vld [vmem:[#allocation5 + $0x114] ss:$8 sps:$4 sm:$0xff]   ;;  %v1487_v13 = vld [vmem:[#allocation5 + $0x110] ss:$8 sps:$4 sm:$0xff]  }
  0x73   : > { %684 = vmatpush1.bf16.msra.mxu1 %v1481_v10  ;;  %v1469_v14 = vld [vmem:[#allocation5 + $0x40] ss:$8 sps:$4 sm:$0xff]   ;;  %v1470_v15 = vld [vmem:[#allocation5 + $0x54] ss:$8 sps:$4 sm:$0xff]   ;;  %v1491_v16 = vld [vmem:[#allocation5 + $0x124] ss:$8 sps:$4 sm:$0xff]  }
  0x74   : > { %635 = vmatpush1.bf16.msra.mxu0 %v1460_v4  ;;  %685 = vmatprep.subr.bf16.mxu1 %v1485_v12  ;;  %v1493_v17 = vld [vmem:[#allocation5 + $0x120] ss:$8 sps:$4 sm:$0xff]   ;;  %v1472_v18 = vld [vmem:[#allocation5 + $0x50] ss:$8 sps:$4 sm:$0xff]   ;;  %v1497_v19 = vld [vmem:[#allocation5 + $0x134] ss:$8 sps:$4 sm:$0xff]  }
  0x75   : > { %636 = vmatprep.subr.bf16.mxu0 %v1461_v5  ;;  %v1473_v20 = vld [vmem:[#allocation5 + $0x64] ss:$8 sps:$4 sm:$0xff]   ;;  %v1499_v21 = vld [vmem:[#allocation5 + $0x130] ss:$8 sps:$4 sm:$0xff]   ;;  %v1475_v22 = vld [vmem:[#allocation5 + $0x60] ss:$8 sps:$4 sm:$0xff]  }
  0x76   : > { %v1503_v23 = vld [vmem:[#allocation5 + $0x144] ss:$8 sps:$4 sm:$0xff]   ;;  %v1476_v24 = vld [vmem:[#allocation5 + $0x74] ss:$8 sps:$4 sm:$0xff]   ;;  %v1505_v25 = vld [vmem:[#allocation5 + $0x140] ss:$8 sps:$4 sm:$0xff]  }
  0x77   : > { %686 = vmatpush1.bf16.msra.mxu1 %v1487_v13  ;;  %v1478_v26 = vld [vmem:[#allocation5 + $0x70] ss:$8 sps:$4 sm:$0xff]   ;;  %v1509_v27 = vld [vmem:[#allocation5 + $0x154] ss:$8 sps:$4 sm:$0xff]   ;;  %v1482_v28 = vld [vmem:[#allocation5 + $0x84] ss:$8 sps:$4 sm:$0xff]  }
  0x78   : > { %637 = vmatpush1.bf16.msra.mxu0 %v1463_v6  ;;  %687 = vmatprep.subr.bf16.mxu1 %v1491_v16  ;;  %v1484_v29 = vld [vmem:[#allocation5 + $0x80] ss:$8 sps:$4 sm:$0xff]   ;;  %v1511_v30 = vld [vmem:[#allocation5 + $0x150] ss:$8 sps:$4 sm:$0xff]   ;;  %v1488_v31 = vld [vmem:[#allocation5 + $0x94] ss:$8 sps:$4 sm:$0xff]  }
  0x79   : > { %638 = vmatprep.subr.bf16.mxu0 %v1464_v7  ;;  %v1515_v32 = vld [vmem:[#allocation5 + $0x164] ss:$8 sps:$4 sm:$0xff]   ;;  %v1490_v33 = vld [vmem:[#allocation5 + $0x90] ss:$8 sps:$4 sm:$0xff]   ;;  %v1517_v36 = vld [vmem:[#allocation5 + $0x160] ss:$8 sps:$4 sm:$0xff]  }
  0x7a   : > { %v1527_v34 = vld [vmem:[%s1972_s15] sm:$0xff]   ;;  %v1528_v35 = vld [vmem:[%s1972_s15 + $0x8] ss:$0 sps:$4 sm:$0xff]   ;;  %vm338_vm1 = vcmask 1045504   ;;  %v1529_v47 = vld [vmem:[#allocation7 + $0x40] sm:$0xff]   ;;  %v1735_v9 = vmov 0.0  }
  0x7b   : > { %688 = vmatpush1.bf16.msra.mxu1 %v1493_v17  ;;  %v1521_v37 = vld [vmem:[#allocation5 + $0x174] ss:$8 sps:$4 sm:$0xff]   ;;  %v333_v38 = vrot.slane %v1527_v34, 1  ;;  %v334_v39 = vrot.slane %v1528_v35, 1  ;;  %v1494_v40 = vld [vmem:[#allocation5 + $0xa4] ss:$8 sps:$4 sm:$0xff]  }
  0x7c   : > { %639 = vmatpush1.bf16.msra.mxu0 %v1466_v8  ;;  %689 = vmatprep.subr.bf16.mxu1 %v1497_v19  ;;  %v1496_v41 = vld [vmem:[#allocation5 + $0xa0] ss:$8 sps:$4 sm:$0xff]   ;;  %v1523_v42 = vld [vmem:[#allocation5 + $0x170] ss:$8 sps:$4 sm:$0xff]   ;;  %v1500_v44 = vld [vmem:[#allocation5 + $0xb4] ss:$8 sps:$4 sm:$0xff]  }
  0x7d   : > { %640 = vmatprep.subr.bf16.mxu0 %v1467_v11  ;;  %v335_v43 = vsel %vm332_vm0, %v333_v38, %v334_v39  ;;  %v339_v45 = vrot.slane %v1527_v34, 2  ;;  %v340_v46 = vrot.slane %v1528_v35, 2  ;;  %v1530_v48 = vld [vmem:[#allocation7] sm:$0xff]   ;;  %v1502_v49 = vld [vmem:[#allocation5 + $0xb0] ss:$8 sps:$4 sm:$0xff]   ;;  %v1531_v50 = vld [vmem:[#allocation7 + $0x48] sm:$0xff]  }
  0x7e   : > { %664 = vmatprep.mubr.bf16.mxu0 %v335_v43  ;;  %v1506_v51 = vld [vmem:[#allocation5 + $0xc4] ss:$8 sps:$4 sm:$0xff]   ;;  %v1508_v54 = vld [vmem:[#allocation5 + $0xc0] ss:$8 sps:$4 sm:$0xff]   ;;  %v1533_v55 = vld [vmem:[#allocation7 + $0x50] sm:$0xff]   ;;  %vm1076_vm3 = vcmask 1043456  }
  0x7f   : > { %690 = vmatpush1.bf16.msra.mxu1 %v1499_v21  ;;  %v341_v52 = vsel %vm338_vm1, %v339_v45, %v340_v46  ;;  %v1532_v53 = vld [vmem:[#allocation7 + $0x8] sm:$0xff]   ;;  %v1512_v56 = vld [vmem:[#allocation5 + $0xd4] ss:$8 sps:$4 sm:$0xff]   ;;  %v1514_v57 = vld [vmem:[#allocation5 + $0xd0] ss:$8 sps:$4 sm:$0xff]   ;;  %vm1736_vm4 = vmmov 1  }
  0x80   : > { %641 = vmatpush1.bf16.msra.mxu0 %v1469_v14  ;;  %691 = vmatprep.subr.bf16.mxu1 %v1503_v23  ;;  %v1518_v58 = vld [vmem:[#allocation5 + $0xe4] ss:$8 sps:$4 sm:$0xff]   ;;  %v1520_v59 = vld [vmem:[#allocation5 + $0xe0] ss:$8 sps:$4 sm:$0xff]   ;;  %v1524_v60 = vld [vmem:[#allocation5 + $0xf4] ss:$8 sps:$4 sm:$0xff]  }
  0x81   : > { %642 = vmatprep.subr.bf16.mxu0 %v1470_v15  ;;  %v1526_v61 = vld [vmem:[#allocation5 + $0xf0] ss:$8 sps:$4 sm:$0xff]   ;;  %v1537_v1 = vld [vmem:[#allocation7 + $0x60] sm:$0xff]   ;;  %v1539_v3 = vld [vmem:[#allocation7 + $0x68] sm:$0xff]   ;;  %vm1737_vm6 = vmmov 0   ;;  %s1217_s18 = sshll.u32 %s1968_s11, 4 }
  0x82   : > { %v1534_v62 = vld [vmem:[#allocation7 + $0x10] sm:$0xff]   ;;  %v1535_v63 = vld [vmem:[#allocation7 + $0x58] sm:$0xff]   ;;  %v1538_v2 = vld [vmem:[#allocation7 + $0x20] sm:$0xff]   ;;  %s315_s17 = scalar_lea.vmem [#allocation8], %s1217_s18  ;;  %s1303_s10 = sshll.u32 %s1717_s24, 8 }
  0x83   : > { %692 = vmatpush1.bf16.msra.mxu1 %v1505_v25  ;;  %v1540_v4 = vld [vmem:[#allocation7 + $0x28] sm:$0xff]   ;;  %v1541_v5 = vld [vmem:[#allocation7 + $0x70] sm:$0xff]   ;;  %v1543_v7 = vld [vmem:[#allocation7 + $0x78] sm:$0xff]   ;;  %s1105_s14 = sshll.u32 %s315_s17, 4  ;;  %s2022_s19 = scalar_lea.hbm %s2077_s6, %s1303_s10  ;;  %s2017_s14 = int_to_ptr.vmem [resolvable:$true] %s1105_s14 }
  0x84   : > { %643 = vmatpush1.bf16.msra.mxu0 %v1472_v18  ;;  %693 = vmatprep.subr.bf16.mxu1 %v1509_v27  ;;  %v1542_v6 = vld [vmem:[#allocation7 + $0x30] sm:$0xff]   ;;  %v1544_v8 = vld [vmem:[#allocation7 + $0x38] sm:$0xff]   ;;  %v747_v18 = vlaneseq  ;;  %s1091_s15 = scalar_lea.sflag [#allocation4], %s1968_s11  ;;  %s1639_s29 = scalar_lea.vmem %s2017_s14, 256 }
  0x85   : > { %644 = vmatprep.subr.bf16.mxu0 %v1473_v20  ;;  %v1268_v20 = vld [vmem:[%s2073_s2] ss:$0 sm:$0xff]  ;;  %p1640_p8 = scmp.ne.s32.totalorder %s2017_s14, %s1639_s29  ;;  %p2098_p12 = scmp.ne.s32.totalorder %s2092_s12, 0 }
  0x86   : > { %v748_v21 = vshrl.u32 %v747_v18, 7  ;;  %s1738_s24 = smov [#allocation8]  }
  0x87   : > { %694 = vmatpush1.bf16.msra.mxu1 %v1511_v30  ;;  %p1641_p1 = pnand %p1640_p8, %p2098_p12  ;;  %s1643_s7 = sshll.u32 %s1738_s24, 4  ;;  %s1644_s7 = int_to_ptr.vmem [resolvable:$false] %s1643_s7 }
  0x88   : > { %645 = vmatpush1.bf16.msra.mxu0 %v1475_v22  ;;  %695 = vmatprep.subr.bf16.mxu1 %v1515_v32  ;;  %vm756_vm2 = vcmp.ge.s32.totalorder %v748_v21, 4  ;;  %s1645_s9 = scalar_lea.vmem %s1644_s7, 512  ;;  %p1646_p3 = scmp.lt.s32.totalorder %s2017_s14, %s1644_s7 }
  0x89   : > { %646 = vmatprep.subr.bf16.mxu0 %v1476_v24  ;;  %v1269_v24 = vld [vmem:[%s2076_s5] ss:$0 sm:$0xff]  ;;  %vm1295_vm5 = vmpackc.low %vm1736_vm4, %vm756_vm2  ;;  %p1642_p10 = pneg %p1641_p1  ;;  %p1647_p5 = scmp.lt.s32.totalorder %s1645_s9, %s1639_s29 }
  0x8b   : > { %696 = vmatpush1.bf16.msra.mxu1 %v1517_v36  ;;  %p1648_p9 = por %p1647_p5, %p1646_p3 }
  0x8c   : > { %647 = vmatpush1.bf16.msra.mxu0 %v1478_v26  ;;  %697 = vmatprep.subr.bf16.mxu1 %v1521_v37 }
  0x8d   : > { %648 = vmatprep.subr.bf16.mxu0 %v1482_v28  ;;  %p1649_p2 = pnand %p1648_p9, %p1642_p10 }
  0x8f   : > { %698 = vmatpush1.bf16.msra.mxu1 %v1523_v42 }
  0x90   : > { %649 = vmatpush1.bf16.msra.mxu0 %v1484_v29  ;;  %1304 = vmatprep.subr.bf16.mxu1 %v1529_v47 }
  0x91   : > { %650 = vmatprep.subr.bf16.mxu0 %v1488_v31 }
  0x92   : > { %716 = vmatmul.mubr.bf16.vlgmr.msra.gmra.mrb[0].mxu1 %v341_v52 }
  0x93   : > { %725 = vmatprep.mubr.bf16.mxu1 %v1734_v0  ;;  %1305 = vmatpush3.bf16.msra.mxu1 %v1530_v48  ;;  %v1536_v0 = vld [vmem:[#allocation7 + $0x18] sm:$0xff]  }
  0x94   : > { %651 = vmatpush1.bf16.msra.mxu0 %v1490_v33  ;;  %1306 = vmatprep.subr.bf16.mxu1 %v1531_v50 }
  0x95   : > { %652 = vmatprep.subr.bf16.mxu0 %v1494_v40 }
  0x97   : > { %1307 = vmatpush3.bf16.msra.mxu1 %v1532_v53 }
  0x98   : > { %653 = vmatpush1.bf16.msra.mxu0 %v1496_v41  ;;  %1308 = vmatprep.subr.bf16.mxu1 %v1533_v55 }
  0x99   : > { %654 = vmatprep.subr.bf16.mxu0 %v1500_v44 }
  0x9a   : > { %726 = vmatmul.mubr.bf16.gmra.mrb[4].mxu1 %v340_v46 }
  0x9b   : > { %1309 = vmatpush3.bf16.msra.mxu1 %v1534_v62  ;;  %v1547_v62 = vld [vmem:[#allocation7 + $0x90] sm:$0xff]  }
  0x9c   : > { %655 = vmatpush1.bf16.msra.mxu0 %v1502_v49  ;;  %1310 = vmatprep.subr.bf16.mxu1 %v1535_v63  ;;  %v1548_v63 = vld [vmem:[#allocation7 + $0x98] sm:$0xff]  }
  0x9d   : > { %656 = vmatprep.subr.bf16.mxu0 %v1506_v51 }
  0x9f   : > { %1311 = vmatpush3.bf16.msra.mxu1 %v1536_v0  ;;  %v1549_v0 = vld [vmem:[#allocation7 + $0xa0] sm:$0xff]  }
  0xa0   : > { %657 = vmatpush1.bf16.msra.mxu0 %v1508_v54  ;;  %1312 = vmatprep.subr.bf16.mxu1 %v1537_v1  ;;  %v1550_v1 = vld [vmem:[#allocation7 + $0xa8] sm:$0xff]  }
  0xa1   : > { %658 = vmatprep.subr.bf16.mxu0 %v1512_v56 }
  0xa3   : > { %1313 = vmatpush3.bf16.msra.mxu1 %v1538_v2  ;;  %v1551_v2 = vld [vmem:[#allocation7 + $0xb0] sm:$0xff]  }
  0xa4   : > { %659 = vmatpush1.bf16.msra.mxu0 %v1514_v57  ;;  %1314 = vmatprep.subr.bf16.mxu1 %v1539_v3  ;;  %v1552_v3 = vld [vmem:[#allocation7 + $0xb8] sm:$0xff]  }
  0xa5   : > { %660 = vmatprep.subr.bf16.mxu0 %v1518_v58  ;;  %v1545_v58 = vld [vmem:[#allocation7 + $0x80] sm:$0xff]  }
  0xa7   : > { %1315 = vmatpush3.bf16.msra.mxu1 %v1540_v4 }
  0xa8   : > { %661 = vmatpush1.bf16.msra.mxu0 %v1520_v59  ;;  %1316 = vmatprep.subr.bf16.mxu1 %v1541_v5 }
  0xa9   : > { %662 = vmatprep.subr.bf16.mxu0 %v1524_v60 }
  0xab   : > { %1317 = vmatpush3.bf16.msra.mxu1 %v1542_v6 }
  0xac   : > { %663 = vmatpush1.bf16.msra.mxu0 %v1526_v61  ;;  %1318 = vmatprep.subr.bf16.mxu1 %v1543_v7  ;;  %v1546_v61 = vld [vmem:[#allocation7 + $0x88] sm:$0xff]  }
  0xaf   : > { %665 = vmatmul.mubr.bf16.vlgmr.msra.gmra.mrb[0].mxu0 %v1527_v34  ;;  %1319 = vmatpush3.bf16.msra.mxu1 %v1544_v8 }
  0xb0   : > { %674 = vmatprep.mubr.bf16.mxu0 %v334_v39  ;;  %1335 = vmatprep.subr.bf16.mxu1 %v1735_v9 }
  0xb7   : > { %675 = vmatmul.mubr.bf16.gmra.mrb[4].mxu0 %v1528_v35 }
 0x165   : > { %v717_v10 = vpop.f32.mrb[0].mxu1 }
 0x166   : > { %v719_v11 = vpop.f32.mrb[1].mxu1 }
 0x167   : > { %v721_v12 = vpop.f32.mrb[2].mxu1 }
 0x168   : > { %v723_v13 = vpop.f32.mrb[3].mxu1 }
 0x16d   : > { %v727_v14 = vpop.f32.mrb[4].mxu1 }
 0x16e   : > { %v729_v15 = vpop.f32.mrb[5].mxu1 }
 0x16f   : > { %v731_v16 = vpop.f32.mrb[6].mxu1 }
 0x170   : > { %v732_v17 = vpop.f32.mrb[7].mxu1 }
 0x182   : > { %v666_v19 = vpop.f32.mrb[0].mxu0 }
 0x183   : > { %v718_v22 = vadd.f32 %v717_v10, %v666_v19  ;;  %v668_v23 = vpop.f32.mrb[1].mxu0 }
 0x184   : > { %v720_v25 = vadd.f32 %v719_v11, %v668_v23  ;;  %v670_v26 = vpop.f32.mrb[2].mxu0  ;;  %v1270_v11 = vld [vmem:[%s2075_s4] ss:$0 sm:$0xff] }
 0x185   : > { %v741_v27 = vadd.f32 %v1268_v20, %v718_v22  ;;  %v722_v28 = vadd.f32 %v721_v12, %v670_v26  ;;  %v672_v29 = vpop.f32.mrb[3].mxu0 }
 0x186   : > { %v775_v30 = vadd.f32 %v1269_v24, %v720_v25  ;;  %v724_v31 = vadd.f32 %v723_v13, %v672_v29 }
 0x187   : > { %v744_v32 = vmax.f32 %v741_v27, 0.0  ;;  %v742_v33 = vadd.f32 %v1268_v20, %v722_v28 }
 0x188   : > { %v776_v34 = vadd.f32 %v1269_v24, %v724_v31  ;;  %v1077_v37 = vrot.slane %v775_v30, 4 }
 0x189   : > { %v765_v35 = vsel %vm756_vm2, %v744_v32, 0.0  ;;  %v745_v36 = vmax.f32 %v742_v33, 0.0 }
 0x18a   : > { %v1078_v38 = vrot.slane %v776_v34, 4  ;;  %v676_v39 = vpop.f32.mrb[4].mxu0 }
 0x18b   : > { %v778_v40 = vpack.c.bf16 %v745_v36, %v765_v35  ;;  %v1296_v41 = vpack.c.bf16 %v745_v36, %v744_v32  ;;  %v728_v42 = vadd.f32 %v727_v14, %v676_v39  ;;  %v678_v43 = vpop.f32.mrb[5].mxu0 }
 0x18c   : > { %v730_v44 = vadd.f32 %v729_v15, %v678_v43  ;;  %v680_v45 = vpop.f32.mrb[6].mxu0  ;;  %v1997_v46 = vsel %vm1076_vm3, %v1077_v37, %v1078_v38 }
 0x18d   : > { %v743_v47 = vadd.f32 %v1268_v20, %v728_v42  ;;  %v681_v48 = vpop.f32.mrb[7].mxu0  ;;  %v786_v54 = vrot.slane %v778_v40, 2  ;;  %v782_v57 = vrot.slane %v778_v40, 1 }
 0x18e   : > { %v777_v49 = vadd.f32 %v1269_v24, %v730_v44 }
 0x18f   : > { %v746_v50 = vmax.f32 %v743_v47, 0.0 }
 0x190   : > { %v1080_v51 = vrot.slane %v777_v49, 4 }
 0x191   : > { %v779_v52 = vpack.c.bf16 %v746_v50, %v746_v50 }
 0x192   : > { %v1081_v53 = vsel %vm1076_vm3, %v1078_v38, %v1080_v51 }
 0x193   : > { %v783_v55 = vrot.slane %v779_v52, 1  ;;  %v787_v56 = vrot.slane %v779_v52, 2 }
 0x195   : > { %v784_v59 = vsel %vm332_vm0, %v782_v57, %v783_v55  ;;  %v788_v60 = vsel %vm338_vm1, %v786_v54, %v787_v56 }
 0x196   : > { %1021 = vmatprep.mubr.bf16.mxu1 %v784_v59 }
 0x197   : > { %1297 = vmatmul.mubr.msk.bf16.vlgmr.msra.gmra.mrb[8].mxu1 %vm1295_vm5, %v1296_v41 }
 0x198   : > { %1336 = vmatpush3.bf16.msra.mxu1 %v1545_v58  ;;  %1351 = vmatprep.mubr.msk.bf16.mxu1 %vm1737_vm6, %v1735_v9 }
 0x199   : > { %1337 = vmatprep.subr.bf16.mxu1 %v1735_v9 }
 0x19c   : > { %1338 = vmatpush3.bf16.msra.mxu1 %v1546_v61 }
 0x19d   : > { %1339 = vmatprep.subr.bf16.mxu1 %v1735_v9 }
 0x1a0   : > { %1340 = vmatpush3.bf16.msra.mxu1 %v1547_v62 }
 0x1a1   : > { %1341 = vmatprep.subr.bf16.mxu1 %v1735_v9 }
 0x1a4   : > { %1342 = vmatpush3.bf16.msra.mxu1 %v1548_v63 }
 0x1a5   : > { %1343 = vmatprep.subr.bf16.mxu1 %v1735_v9 }
 0x1a8   : > { %1344 = vmatpush3.bf16.msra.mxu1 %v1549_v0 }
 0x1a9   : > { %1345 = vmatprep.subr.bf16.mxu1 %v1735_v9 }
 0x1ac   : > { %1346 = vmatpush3.bf16.msra.mxu1 %v1550_v1 }
 0x1ad   : > { %1347 = vmatprep.subr.bf16.mxu1 %v1735_v9 }
 0x1b0   : > { %1348 = vmatpush3.bf16.msra.mxu1 %v1551_v2 }
 0x1b1   : > { %1349 = vmatprep.subr.bf16.mxu1 %v1735_v9 }
 0x1b4   : > { %1350 = vmatpush3.bf16.msra.mxu1 %v1552_v3 }
 0x1b7   : > { %1352 = vmatmul.mubr.bf16.vlgmr.msra.gmra.mrb[12].mxu1 %v788_v60 }
 0x26a   : > { %v1320_v4 = vpop.f32.mrb[8].mxu1 }
 0x26b   : > { %v1321_v5 = vpop.f32.mrb[9].mxu1 }
 0x26c   : > { %v1322_v6 = vadd.f32 %v1321_v5, %v1320_v4  ;;  %v1323_v7 = vpop.f32.mrb[10].mxu1 }
 0x26d   : > { %v1324_v8 = vpop.f32.mrb[11].mxu1 }
 0x26e   : > { %v1325_v10 = vadd.f32 %v1324_v8, %v1323_v7  ;;  %v1024_v12 = vadd.f32 %v1322_v6, %v1270_v11 }
 0x270   : > { %v1027_v16 = vadd.f32 %v1325_v10, %v1270_v11 }
 0x28a   : > { %v1064_v13 = vpop.f32.mrb[12].mxu1 }
 0x28b   : > { %v1065_v14 = vadd.f32 %v1064_v13, %v1024_v12  ;;  %v1353_v15 = vpop.f32.mrb[13].mxu1 }
 0x28c   : > { %v1067_v9 = vpop.f32.mrb[14].mxu1 }
 0x28d   : > { %v1071_v17 = vmax.f32 %v1065_v14, 0.0  ;;  %v1068_v18 = vadd.f32 %v1067_v9, %v1027_v16  ;;  %v1354_v19 = vpop.f32.mrb[15].mxu1 }
 0x28f   : > { %v1084_v20 = vadd.f32 %v1997_v46, %v1071_v17  ;;  %v1072_v21 = vmax.f32 %v1068_v18, 0.0 }
 0x291   : > { %v1086_v22 = vmax.f32 %v1084_v20, 0.0  ;;  %v1085_v23 = vadd.f32 %v1081_v53, %v1072_v21 }
 0x293   : > { %1088 = vst [vmem:[%s315_s17] sm:$0xff] %v1086_v22  ;;  %v1087_v24 = vmax.f32 %v1085_v23, 0.0 }
 0x295   : > { %1089 = vst [vmem:[%s315_s17 + $0x8] sm:$0xff] %v1087_v24 }
 0x296   : > { %1652 = shalt.err (!%p1649_p2)
}
 0x297   : > { %s1653_s8 = scalar_lea.hbm %s2022_s19, 256  ;;  %s1657_s18 = scalar_lea.hbm %s2077_s6, 512 }
 0x298   : > { %p1654_p0 = scmp.ne.s32.totalorder %s2022_s19, %s1653_s8  ;;  %p1658_p6 = scmp.lt.u32.totalorder %s2022_s19, %s2077_s6 }
 0x299   : > { %p1659_p7 = scmp.lt.u32.totalorder %s1657_s18, %s1653_s8  ;;  %p1661_p8 = scmp.lt.u32.totalorder %s1653_s8, %s2022_s19 }
 0x29a   : > { %p1655_p4 = pnand %p1654_p0, %p2098_p12 }
 0x29b   : > { %p1660_p11 = por %p1659_p7, %p1658_p6 }
 0x29c   : > { %p1656_p13 = pneg %p1655_p4 }
 0x29d   : > { %p1662_p1 = por %p1661_p8, %p1660_p11 }
 0x29f   : > { %p1663_p10 = pnand %p1662_p1, %p1656_p13 }
 0x2a1   : > { %1666 = shalt.err (!%p1663_p10)
}
 0x2a2   : > { %s1739_s28 = smov 128   ;;  %s1740_s30 = smov 8  }
 0x2a3   : > { %1372 = dma.vmem_to_hbm [thread:$0]  (%p2098_p12), %s2017_s14, 256, %s2022_s19, %s1091_s15, %s1739_s28, %s1739_s28, %s1740_s30  }
 0x2a4 PF: > { %s2099_s29 = sld [smem:[#allocation12_spill]]  ;;  %s1120_s24 = sand.u32 1, %s1705_s21  }
 0x2a5   : > { %p2101_p5 = scmp.ge.s32.totalorder %s1725_s26, 2  ;;  %s1121_s7 = scalar_lea.sflag [#allocation4], %s1120_s24 }
 0x2aa   : > { %p2100_p3 = scmp.ne.s32.totalorder %s2099_s29, 0 }
 0x2ac   : > { %p1386_p9 = pnand %p2101_p5, %p2100_p3 }
 0x2ae   : > { %1700 = dma.done.wait (!%p1386_p9), %s1121_s7, 256  }
 0x2af   : > { %1702 = vsyncadd (!%p1386_p9), %s1121_s7, 4294967040  ;;  %s23_s26 = sadd.s32 1, %s1725_s26   ;;  %s2102_s21 = smov %s1709_s22 }
 0x2b0   : > { %p20_p2 = scmp.ge.s32.totalorder %s23_s26, 4   ;;  %s2103_s22 = smov %s1713_s23 }
 0x2b1   : > { %s2104_s23 = smov %s1924_s27  ;;  %s2105_s24 = smov %s1721_s25 }
 0x2b2   : > { %s2106_s25 = smov %s2108_s16  ;;  %22 = sbr.rel (!%p20_p2) target bundleno = 7 (0x7), region = 97 }
 0x2b9   :  { %1126 = vsyncpa [#allocation3], 1 }
 0x2ba   :  { %1128 = vsyncpa [#allocation3 + $0x1], 1 }
 0x2bb   :  { %1129 = vsyncpa [#allocation6], 1 }
 0x2bc   :  { %1130 = vsyncpa [#allocation4], 1 }
 0x2bd   :  { %1132 = vsyncpa [#allocation4 + $0x1], 1 }

</bundles_post_ra>
